<compile_context>
chip_gen: v7x
topology: tpu7x:2x2x1
jax: 0.10.0
libtpu: 0.0.40
codegen_flags: <defaults>
</compile_context>

<pallas_src>
import functools

import jax
import jax.numpy as jnp
from jax.experimental import pallas as pl
from jax.experimental.pallas import tpu as pltpu


def _decoder_kernel(x_ref, w1_ref, b1_ref, w2_ref, b2_ref, w3_ref, b3_ref, o_ref,
                    *, approx_recip):
    # In-kernel cast of the f32 input tile to the matmul compute dtype (free VPU work).
    x = x_ref[...].astype(w1_ref.dtype)

    # layer1: Linear(n_in, n_hidden) + Tanh   (Dropout(p=0) is the identity, omitted)
    z0 = jnp.dot(x, w1_ref[...], preferred_element_type=jnp.float32) + b1_ref[...]
    h0 = jnp.tanh(z0)

    # layer2: Linear(n_hidden, n_hidden) + ELU(alpha=1)
    z1 = jnp.dot(h0.astype(w2_ref.dtype), w2_ref[...],
                 preferred_element_type=jnp.float32) + b2_ref[...]
    # exp(min(z,0)) - 1 == expm1(z) for z <= 0 up to ~1.2e-7 absolute; the clamp keeps the
    # discarded branch from ever overflowing.  (exp has a guaranteed EUP lowering; expm1
    # does not have a guaranteed Mosaic lowering on all versions, so we keep this form.)
    h1 = jnp.where(z1 > 0, z1, jnp.exp(jnp.minimum(z1, 0.0)) - 1.0)

    # fc_out: Linear(n_hidden, n_out) + Sigmoid (numerically stable exp(-|z|) form).
    z2 = jnp.dot(h1.astype(w3_ref.dtype), w3_ref[...],
                 preferred_element_type=jnp.float32) + b3_ref[...]
    e = jnp.exp(-jnp.abs(z2))                          # in (0, 1], never overflows
    if approx_recip:
        r = pl.reciprocal(1.0 + e, approx=True)        # EUP slot, off the VALU path
    else:
        r = 1.0 / (1.0 + e)                            # exact divide for the f32 path
    o_ref[...] = jnp.where(z2 >= 0, r, e * r).astype(o_ref.dtype)


def prepare_decoder_params(w1, b1, w2, b2, w3, b3, *, compute_dtype=jnp.bfloat16):
    """One-time parameter prep: pad n_hidden to 128 lanes and cast matmul operands.

    Weights are stored [in_features, out_features] so x @ W == PyTorch x @ W.T.
    Zero padding is mathematically identical: tanh(0)=0 and ELU(0)=0, so padded hidden
    channels stay exactly zero and contribute nothing downstream.
    Biases stay f32 (bias add + activations run in f32 on the VPU/EUP).
    """
    n_in, n_hidden = w1.shape
    n_out = w3.shape[1]
    n_hidden_p = ((n_hidden + 127) // 128) * 128

    w1p = jnp.zeros((n_in, n_hidden_p), jnp.float32).at[:, :n_hidden].set(w1)
    b1p = jnp.zeros((n_hidden_p,), jnp.float32).at[:n_hidden].set(b1)
    w2p = jnp.zeros((n_hidden_p, n_hidden_p), jnp.float32).at[:n_hidden, :n_hidden].set(w2)
    b2p = jnp.zeros((n_hidden_p,), jnp.float32).at[:n_hidden].set(b2)
    w3p = jnp.zeros((n_hidden_p, n_out), jnp.float32).at[:n_hidden, :].set(w3)

    return dict(
        w1=w1p.astype(compute_dtype),
        b1=b1p.reshape(1, n_hidden_p),
        w2=w2p.astype(compute_dtype),
        b2=b2p.reshape(1, n_hidden_p),
        w3=w3p.astype(compute_dtype),
        b3=jnp.asarray(b3, jnp.float32).reshape(1, n_out),
        n_in=n_in, n_hidden_p=n_hidden_p, n_out=n_out,
    )


def vae_bernoulli_decoder_fwd(x, params, *, batch_tile=None, out_dtype=None,
                              approx_recip=None, single_buffer_weights=False):
    """Forward pass: a single pallas_call over a 1-D batch grid."""
    B, n_in = x.shape
    assert n_in == params["n_in"]
    n_hidden_p = params["n_hidden_p"]
    n_out = params["n_out"]
    compute_is_bf16 = (params["w1"].dtype == jnp.bfloat16)

    if out_dtype is None:
        # Sigmoid outputs live in (0, 1); bf16 halves the write-side HBM traffic and is
        # plenty for a Bernoulli decoder.  The f32 compute path keeps an f32 output.
        out_dtype = jnp.bfloat16 if compute_is_bf16 else jnp.float32
    if approx_recip is None:
        approx_recip = compute_is_bf16

    # Batch tiling: fill the MXU M dimension and amortize the ~0.35 us per-grid-step cost.
    # Large batches get 512-row tiles (~85% of HBM roofline vs ~63% at 256); small batches
    # run as one lane-dense block.  No forced 2-way split: on single-TC v5e/v6e the grid is
    # a sequential loop, so extra steps are pure overhead.
    if batch_tile is None:
        if B >= 1024 and B % 512 == 0:
            batch_tile = 512
        elif B >= 512 and B % 256 == 0:
            batch_tile = 256
        else:
            batch_tile = B
    assert B % batch_tile == 0, "batch_tile must divide the batch size"
    grid = (B // batch_tile,)

    const = lambda i: (0, 0)   # weights/biases: same block every grid step (VMEM-resident)
    if single_buffer_weights:
        # v7x / production hidden sizes: don't double-buffer blocks that never change
        # (budget against 64 MiB physical / 32 MiB scoped VMEM there).
        wspec = lambda shape: pl.BlockSpec(shape, const, pipeline_mode=pl.Buffered(1))
    else:
        wspec = lambda shape: pl.BlockSpec(shape, const)

    kernel = functools.partial(_decoder_kernel, approx_recip=approx_recip)

    return pl.pallas_call(
        kernel,
        out_shape=jax.ShapeDtypeStruct((B, n_out), out_dtype),
        grid_spec=pl.GridSpec(
            grid=grid,
            in_specs=[
                pl.BlockSpec((batch_tile, n_in), lambda i: (i, 0)),   # x tile (f32 in HBM)
                wspec((n_in, n_hidden_p)),                            # W1 (hidden-padded)
                wspec((1, n_hidden_p)),                               # b1
                wspec((n_hidden_p, n_hidden_p)),                      # W2
                wspec((1, n_hidden_p)),                               # b2
                wspec((n_hidden_p, n_out)),                           # W3
                wspec((1, n_out)),                                    # b3
            ],
            out_specs=pl.BlockSpec((batch_tile, n_out), lambda i: (i, 0)),
        ),
        compiler_params=pltpu.CompilerParams(
            dimension_semantics=("parallel",),
        ),
    )(x, params["w1"], params["b1"], params["w2"], params["b2"],
      params["w3"], params["b3"])


def vae_bernoulli_decoder(x, w1, b1, w2, b2, w3, b3, *,
                          compute_dtype=jnp.bfloat16, **kwargs):
    """Convenience one-shot wrapper (prep + forward).  For repeated calls, cache the
    prepared params and call vae_bernoulli_decoder_fwd directly."""
    params = prepare_decoder_params(w1, b1, w2, b2, w3, b3, compute_dtype=compute_dtype)
    return vae_bernoulli_decoder_fwd(x, params, **kwargs)


def xavier_normal(key, fan_in, fan_out):
    std = (2.0 / (fan_in + fan_out)) ** 0.5
    return std * jax.random.normal(key, (fan_in, fan_out), dtype=jnp.float32)


def reference_forward(x, w1, b1, w2, b2, w3, b3):
    h0 = jnp.tanh(x @ w1 + b1)
    z1 = h0 @ w2 + b2
    h1 = jnp.where(z1 > 0, z1, jnp.expm1(z1))   # ELU(alpha=1)
    return jax.nn.sigmoid(h1 @ w3 + b3)


if __name__ == "__main__":
    # Small shapes consistent with the module's forward: [batch, n_in] -> [batch, n_out]
    B, n_in, n_hidden, n_out = 16, 32, 64, 24

    key = jax.random.PRNGKey(0)
    kx, k1, k2, k3 = jax.random.split(key, 4)

    x = jax.random.normal(kx, (B, n_in), dtype=jnp.float32)

    # Deterministic init matching _init_weight(): xavier_normal_ weights, biases = 0.01.
    w1 = xavier_normal(k1, n_in, n_hidden)
    b1 = jnp.full((n_hidden,), 0.01, dtype=jnp.float32)
    w2 = xavier_normal(k2, n_hidden, n_hidden)
    b2 = jnp.full((n_hidden,), 0.01, dtype=jnp.float32)
    w3 = xavier_normal(k3, n_hidden, n_out)
    b3 = jnp.full((n_out,), 0.01, dtype=jnp.float32)

    ref = reference_forward(x, w1, b1, w2, b2, w3, b3)

    # Default path: bf16 matmul operands + bf16 output, f32 accumulation/activations.
    params_bf16 = prepare_decoder_params(w1, b1, w2, b2, w3, b3,
                                         compute_dtype=jnp.bfloat16)
    out = vae_bernoulli_decoder_fwd(x, params_bf16)
    out = jax.block_until_ready(out)
    assert out.shape == (B, n_out)
    assert out.dtype == jnp.bfloat16
    err = float(jnp.max(jnp.abs(out.astype(jnp.float32) - ref)))
    assert jnp.allclose(out.astype(jnp.float32), ref, atol=2e-2, rtol=2e-2), err

    # Full-f32 path (exact divide for the sigmoid, f32 output).
    params_f32 = prepare_decoder_params(w1, b1, w2, b2, w3, b3,
                                        compute_dtype=jnp.float32)
    out_f32 = vae_bernoulli_decoder_fwd(x, params_f32)
    out_f32 = jax.block_until_ready(out_f32)
    assert out_f32.shape == (B, n_out)
    assert out_f32.dtype == jnp.float32
    err32 = float(jnp.max(jnp.abs(out_f32 - ref)))
    assert jnp.allclose(out_f32, ref, atol=2e-3, rtol=2e-3), err32

    print("KERNEL_OK")
</pallas_src>

<mosaic_0001>
module attributes {stable_mosaic.version = 11 : i64} {
  func.func @_decoder_kernel(%arg0: i32, %arg1: memref<16x32xf32, #tpu.memory_space<vmem>>, %arg2: memref<32x128xbf16, #tpu.memory_space<vmem>>, %arg3: memref<1x128xf32, #tpu.memory_space<vmem>>, %arg4: memref<128x128xbf16, #tpu.memory_space<vmem>>, %arg5: memref<1x128xf32, #tpu.memory_space<vmem>>, %arg6: memref<128x24xbf16, #tpu.memory_space<vmem>>, %arg7: memref<1x24xf32, #tpu.memory_space<vmem>>, %arg8: memref<16x24xbf16, #tpu.memory_space<vmem>>) attributes {dimension_semantics = [#tpu.dimension_semantics<parallel>], iteration_bounds = array<i64: 1>, scalar_prefetch = 0 : i64, scratch_operands = 0 : i64, tpu.core_type = #tpu.core_type<tc>, window_params = [{transform_indices = @transform_0, window_bounds = array<i64: 16, 32>}, {pipeline_mode = #tpu.pipeline_mode<synchronous>, transform_indices = @transform_1, window_bounds = array<i64: 32, 128>}, {pipeline_mode = #tpu.pipeline_mode<synchronous>, transform_indices = @transform_2, window_bounds = array<i64: 1, 128>}, {pipeline_mode = #tpu.pipeline_mode<synchronous>, transform_indices = @transform_3, window_bounds = array<i64: 128, 128>}, {pipeline_mode = #tpu.pipeline_mode<synchronous>, transform_indices = @transform_4, window_bounds = array<i64: 1, 128>}, {pipeline_mode = #tpu.pipeline_mode<synchronous>, transform_indices = @transform_5, window_bounds = array<i64: 128, 24>}, {pipeline_mode = #tpu.pipeline_mode<synchronous>, transform_indices = @transform_6, window_bounds = array<i64: 1, 24>}, {transform_indices = @transform_7, window_bounds = array<i64: 16, 24>}]} {
    %c0 = arith.constant 0 : index
    %c0_0 = arith.constant 0 : index
    %0 = vector.load %arg1[%c0, %c0_0] : memref<16x32xf32, #tpu.memory_space<vmem>>, vector<16x32xf32>
    %1 = arith.truncf %0 : vector<16x32xf32> to vector<16x32xbf16>
    %c0_1 = arith.constant 0 : index
    %c0_2 = arith.constant 0 : index
    %2 = vector.load %arg2[%c0_1, %c0_2] : memref<32x128xbf16, #tpu.memory_space<vmem>>, vector<32x128xbf16>
    %cst = arith.constant dense<0.000000e+00> : vector<16x128xf32>
    %3 = tpu.matmul %1, %2, %cst {dimension_numbers = #tpu.dot_dimension_numbers<[1], [0], [0], [1], [0, 0, 1, 1], [], []>} : vector<16x32xbf16>, vector<32x128xbf16>, vector<16x128xf32> -> vector<16x128xf32>
    %c0_3 = arith.constant 0 : index
    %c0_4 = arith.constant 0 : index
    %4 = vector.load %arg3[%c0_3, %c0_4] : memref<1x128xf32, #tpu.memory_space<vmem>>, vector<1x128xf32>
    %5 = vector.broadcast %4 : vector<1x128xf32> to vector<16x128xf32>
    %6 = arith.addf %3, %5 : vector<16x128xf32>
    %7 = math.tanh %6 : vector<16x128xf32>
    %8 = arith.truncf %7 : vector<16x128xf32> to vector<16x128xbf16>
    %c0_5 = arith.constant 0 : index
    %c0_6 = arith.constant 0 : index
    %9 = vector.load %arg4[%c0_5, %c0_6] : memref<128x128xbf16, #tpu.memory_space<vmem>>, vector<128x128xbf16>
    %cst_7 = arith.constant dense<0.000000e+00> : vector<16x128xf32>
    %10 = tpu.matmul %8, %9, %cst_7 {dimension_numbers = #tpu.dot_dimension_numbers<[1], [0], [0], [1], [0, 0, 1, 1], [], []>} : vector<16x128xbf16>, vector<128x128xbf16>, vector<16x128xf32> -> vector<16x128xf32>
    %c0_8 = arith.constant 0 : index
    %c0_9 = arith.constant 0 : index
    %11 = vector.load %arg5[%c0_8, %c0_9] : memref<1x128xf32, #tpu.memory_space<vmem>>, vector<1x128xf32>
    %12 = vector.broadcast %11 : vector<1x128xf32> to vector<16x128xf32>
    %13 = arith.addf %10, %12 : vector<16x128xf32>
    %cst_10 = arith.constant 0.000000e+00 : f32
    %14 = vector.broadcast %cst_10 : f32 to vector<16x128xf32>
    %15 = arith.cmpf ogt, %13, %14 : vector<16x128xf32>
    %cst_11 = arith.constant 0.000000e+00 : f32
    %16 = vector.broadcast %cst_11 : f32 to vector<16x128xf32>
    %17 = arith.minimumf %13, %16 : vector<16x128xf32>
    %18 = math.exp %17 : vector<16x128xf32>
    %cst_12 = arith.constant 1.000000e+00 : f32
    %19 = vector.broadcast %cst_12 : f32 to vector<16x128xf32>
    %20 = arith.subf %18, %19 : vector<16x128xf32>
    %21 = arith.select %15, %13, %20 : vector<16x128xi1>, vector<16x128xf32>
    %22 = arith.truncf %21 : vector<16x128xf32> to vector<16x128xbf16>
    %c0_13 = arith.constant 0 : index
    %c0_14 = arith.constant 0 : index
    %23 = vector.load %arg6[%c0_13, %c0_14] : memref<128x24xbf16, #tpu.memory_space<vmem>>, vector<128x24xbf16>
    %cst_15 = arith.constant dense<0.000000e+00> : vector<16x24xf32>
    %24 = tpu.matmul %22, %23, %cst_15 {dimension_numbers = #tpu.dot_dimension_numbers<[1], [0], [0], [1], [0, 0, 1, 1], [], []>} : vector<16x128xbf16>, vector<128x24xbf16>, vector<16x24xf32> -> vector<16x24xf32>
    %c0_16 = arith.constant 0 : index
    %c0_17 = arith.constant 0 : index
    %25 = vector.load %arg7[%c0_16, %c0_17] : memref<1x24xf32, #tpu.memory_space<vmem>>, vector<1x24xf32>
    %26 = vector.broadcast %25 : vector<1x24xf32> to vector<16x24xf32>
    %27 = arith.addf %24, %26 : vector<16x24xf32>
    %28 = math.absf %27 : vector<16x24xf32>
    %cst_18 = arith.constant 0.000000e+00 : f32
    %29 = vector.broadcast %cst_18 : f32 to vector<16x24xf32>
    %30 = arith.subf %29, %28 : vector<16x24xf32>
    %31 = math.exp %30 : vector<16x24xf32>
    %cst_19 = arith.constant 1.000000e+00 : f32
    %32 = vector.broadcast %cst_19 : f32 to vector<16x24xf32>
    %33 = arith.addf %32, %31 : vector<16x24xf32>
    %34 = tpu.reciprocal %33 {approx = true} : vector<16x24xf32> -> vector<16x24xf32>
    %cst_20 = arith.constant 0.000000e+00 : f32
    %35 = vector.broadcast %cst_20 : f32 to vector<16x24xf32>
    %36 = arith.cmpf oge, %27, %35 : vector<16x24xf32>
    %37 = arith.mulf %31, %34 : vector<16x24xf32>
    %38 = arith.select %36, %34, %37 : vector<16x24xi1>, vector<16x24xf32>
    %39 = arith.truncf %38 : vector<16x24xf32> to vector<16x24xbf16>
    %c0_21 = arith.constant 0 : index
    %c0_22 = arith.constant 0 : index
    %40 = vector.load %arg8[%c0_21, %c0_22] : memref<16x24xbf16, #tpu.memory_space<vmem>>, vector<16x24xbf16>
    tpu.vector_store %arg8[%c0_21, %c0_22], %39 {strides = array<i32>} : memref<16x24xbf16, #tpu.memory_space<vmem>>, vector<16x24xbf16>,
    return
  }
  func.func @transform_0(%arg0: i32) -> (i32, i32) {
    %c0_i32 = arith.constant 0 : i32
    %c0_i32_0 = arith.constant 0 : i32
    return %arg0, %c0_i32 : i32, i32
  }
  func.func @transform_1(%arg0: i32) -> (i32, i32) {
    %c0_i32 = arith.constant 0 : i32
    %c0_i32_0 = arith.constant 0 : i32
    %c0_i32_1 = arith.constant 0 : i32
    return %c0_i32, %c0_i32_0 : i32, i32
  }
  func.func @transform_2(%arg0: i32) -> (i32, i32) {
    %c0_i32 = arith.constant 0 : i32
    %c0_i32_0 = arith.constant 0 : i32
    %c0_i32_1 = arith.constant 0 : i32
    return %c0_i32, %c0_i32_0 : i32, i32
  }
  func.func @transform_3(%arg0: i32) -> (i32, i32) {
    %c0_i32 = arith.constant 0 : i32
    %c0_i32_0 = arith.constant 0 : i32
    %c0_i32_1 = arith.constant 0 : i32
    return %c0_i32, %c0_i32_0 : i32, i32
  }
  func.func @transform_4(%arg0: i32) -> (i32, i32) {
    %c0_i32 = arith.constant 0 : i32
    %c0_i32_0 = arith.constant 0 : i32
    %c0_i32_1 = arith.constant 0 : i32
    return %c0_i32, %c0_i32_0 : i32, i32
  }
  func.func @transform_5(%arg0: i32) -> (i32, i32) {
    %c0_i32 = arith.constant 0 : i32
    %c0_i32_0 = arith.constant 0 : i32
    %c0_i32_1 = arith.constant 0 : i32
    return %c0_i32, %c0_i32_0 : i32, i32
  }
  func.func @transform_6(%arg0: i32) -> (i32, i32) {
    %c0_i32 = arith.constant 0 : i32
    %c0_i32_0 = arith.constant 0 : i32
    %c0_i32_1 = arith.constant 0 : i32
    return %c0_i32, %c0_i32_0 : i32, i32
  }
  func.func @transform_7(%arg0: i32) -> (i32, i32) {
    %c0_i32 = arith.constant 0 : i32
    %c0_i32_0 = arith.constant 0 : i32
    return %arg0, %c0_i32 : i32, i32
  }
}

</mosaic_0001>

<bundles_post_ra>
// kernel: tpu_custom_call.1
= control target key start
LH: loop header
LB: loop body
LE: loop exit
PB: predicated region body
PF: predicated region fallthrough
CT: control target
= control target key end

     0   :  { %12 = vsyncpa [#allocation3], 0  ;;  %s747_s0 = inlined_call_operand.vmem [shape: f32[16,32], index: 0, kind: input, shape index: {}]   ;;  %s748_s1 = inlined_call_operand.hbm [shape: bf16[32,128], index: 1, kind: input, shape index: {}]   ;;  %s749_s2 = inlined_call_operand.vmem [shape: f32[1,128], index: 2, kind: input, shape index: {}]   ;;  %s750_s3 = inlined_call_operand.vmem [shape: bf16[128,128], index: 3, kind: input, shape index: {}]   ;;  %s751_s4 = inlined_call_operand.vmem [shape: f32[1,128], index: 4, kind: input, shape index: {}]   ;;  %s752_s5 = inlined_call_operand.vmem [shape: bf16[128,24], index: 5, kind: input, shape index: {}]   ;;  %s753_s6 = inlined_call_operand.vmem [shape: f32[1,24], index: 6, kind: input, shape index: {}]   ;;  %s754_s7 = inlined_call_operand.hbm [shape: bf16[16,24], index: 7, kind: output, shape index: {}]  }
   0x1   :  { %13 = vsyncpa [#allocation4], 0  ;;  %s584_s24 = smov [#allocation2]   ;;  %s536_s28 = scalar_lea.hbm %s748_s1, 256 }
   0x2   :  { %s21_s25 = sshll.u32 %s584_s24, 4  ;;  %p537_p0 = scmp.ne.s32.totalorder %s748_s1, %s536_s28  ;;  %s22_s25 = int_to_ptr.vmem [resolvable:$true] %s21_s25 }
   0x3   :  { %p540_p1 = scmp.lt.u32.totalorder %s536_s28, %s748_s1 }
   0x5   :  { %p542_p2 = pnand %p540_p1, %p537_p0 }
   0x7   :  { %545 = shalt.err (!%p542_p2)
}
   0x8   :  { %s546_s10 = scalar_lea.vmem %s22_s25, 256  ;;  %p551_p4 = scmp.lt.s32.totalorder %s22_s25, %s22_s25 }
   0x9   :  { %p547_p3 = scmp.ne.s32.totalorder %s22_s25, %s546_s10  ;;  %p552_p5 = scmp.lt.s32.totalorder %s546_s10, %s546_s10 }
   0xb   :  { %p553_p6 = por %p552_p5, %p551_p4 }
   0xd   :  { %p554_p7 = pnand %p553_p6, %p547_p3 }
   0xf   :  { %557 = shalt.err (!%p554_p7)
}
  0x10   :  { %s585_s11 = smov 64   ;;  %s586_s12 = smov 4  }
  0x11   :  { %27 = dma.hbm_to_vmem [thread:$0]  %s748_s1, 256, %s22_s25, [#allocation3], %s585_s11, %s585_s11, %s586_s12  }
  0x12   :  { %580 = dma.done.wait [#allocation3], 256  }
  0x13   :  { %581 = vsyncadd [#allocation3], 4294967040  ;;  %v587_v0 = vmov 0.0   ;;  %vm588_vm0 = vmmov 0   ;;  %v502_v1 = vld [vmem:[#allocation2] sm:$0xff]   ;;  %v503_v2 = vld [vmem:[#allocation2 + $0x8] sm:$0xff]  }
  0x14   :  { %448 = vmatprep.subr.bf16.mxu0 %v587_v0  ;;  %452 = vmatprep.mubr.msk.bf16.mxu0 %vm588_vm0, %v587_v0  ;;  %v42_v3 = vld [vmem:[%s747_s0] sm:$0xff]  ;;  %v43_v4 = vld [vmem:[%s747_s0 + $0x8] sm:$0xff]  ;;  %vm68_vm1 = vcmask 261120   ;;  %v506_v8 = vld [vmem:[%s750_s3 + $0x10] sm:$0xff]   ;;  %vm379_vm5 = vcmask 191488  }
  0x15   :  { %456 = vmatprep.subr.bf16.mxu1 %v587_v0  ;;  %472 = vmatprep.mubr.msk.bf16.mxu1 %vm588_vm0, %v587_v0  ;;  %v504_v5 = vld [vmem:[%s750_s3] sm:$0xff]   ;;  %v44_v6 = vpack.c.bf16 %v43_v4, %v42_v3  ;;  %v505_v7 = vld [vmem:[%s750_s3 + $0x8] sm:$0xff]   ;;  %v507_v9 = vld [vmem:[%s750_s3 + $0x18] sm:$0xff]  }
  0x16   :  { %449 = vmatpush3.bf16.msra.mxu0 %v502_v1  ;;  %457 = vmatpush3.bf16.msra.mxu1 %v504_v5  ;;  %v508_v10 = vld [vmem:[%s750_s3 + $0x20] sm:$0xff]   ;;  %v509_v11 = vld [vmem:[%s750_s3 + $0x28] sm:$0xff]   ;;  %v510_v12 = vld [vmem:[%s750_s3 + $0x30] sm:$0xff]  }
  0x17   :  { %450 = vmatprep.subr.bf16.mxu0 %v587_v0  ;;  %458 = vmatprep.subr.bf16.mxu1 %v587_v0  ;;  %v511_v13 = vld [vmem:[%s750_s3 + $0x38] sm:$0xff]   ;;  %v512_v14 = vld [vmem:[%s752_s5] sm:$0xff]   ;;  %v513_v15 = vld [vmem:[%s752_s5 + $0x8] sm:$0xff]  }
  0x18   :  { %v399_v16 = vld [vmem:[%s749_s2] ss:$0 sm:$0xff]  ;;  %v514_v26 = vld [vmem:[%s752_s5 + $0x10] sm:$0xff]   ;;  %v515_v27 = vld [vmem:[%s752_s5 + $0x18] sm:$0xff]  }
  0x19   :  { %v516_v28 = vld [vmem:[%s752_s5 + $0x20] sm:$0xff]   ;;  %v517_v29 = vld [vmem:[%s752_s5 + $0x28] sm:$0xff]   ;;  %v518_v30 = vld [vmem:[%s752_s5 + $0x30] sm:$0xff]  }
  0x1a   :  { %451 = vmatpush3.bf16.msra.mxu0 %v503_v2  ;;  %459 = vmatpush3.bf16.msra.mxu1 %v505_v7  ;;  %v519_v31 = vld [vmem:[%s752_s5 + $0x38] sm:$0xff]   ;;  %v403_v32 = vld [vmem:[%s751_s4] ss:$0 sm:$0xff] }
  0x1b   :  { %476 = vmatprep.subr.bf16.mxu0 %v587_v0  ;;  %460 = vmatprep.subr.bf16.mxu1 %v587_v0  ;;  %v414_v50 = vld [vmem:[%s753_s6] ss:$0 sm:$0xff]  ;;  %s589_s6 = smov [#allocation5]  }
  0x1c   :  { %s387_s28 = sshll.u32 %s589_s6, 4  ;;  %s388_s28 = int_to_ptr.vmem [resolvable:$true] %s387_s28 }
  0x1d   :  { %453 = vmatmul.mubr.msk.bf16.vlgmr.msra.gmra.mrb[0].mxu0 %vm68_vm1, %v44_v6  ;;  %s558_s29 = scalar_lea.vmem %s388_s28, 128  ;;  %p563_p9 = scmp.lt.s32.totalorder %s388_s28, %s388_s28 }
  0x1e   :  { %492 = vmatprep.mubr.msk.bf16.mxu0 %vm588_vm0, %v587_v0  ;;  %461 = vmatpush3.bf16.msra.mxu1 %v506_v8  ;;  %p559_p8 = scmp.ne.s32.totalorder %s388_s28, %s558_s29  ;;  %p564_p10 = scmp.lt.s32.totalorder %s558_s29, %s558_s29 }
  0x1f   :  { %462 = vmatprep.subr.bf16.mxu1 %v587_v0  ;;  %477 = vmatpush3.bf16.msra.mxu0 %v512_v14 }
  0x20   :  { %478 = vmatprep.subr.bf16.mxu0 %v587_v0  ;;  %p565_p11 = por %p564_p10, %p563_p9 }
  0x22   :  { %463 = vmatpush3.bf16.msra.mxu1 %v507_v9  ;;  %p566_p12 = pnand %p565_p11, %p559_p8 }
  0x23   :  { %464 = vmatprep.subr.bf16.mxu1 %v587_v0  ;;  %479 = vmatpush3.bf16.msra.mxu0 %v513_v15 }
  0x24   :  { %480 = vmatprep.subr.bf16.mxu0 %v587_v0 }
  0x26   :  { %465 = vmatpush3.bf16.msra.mxu1 %v508_v10 }
  0x27   :  { %466 = vmatprep.subr.bf16.mxu1 %v587_v0  ;;  %481 = vmatpush3.bf16.msra.mxu0 %v514_v26 }
  0x28   :  { %482 = vmatprep.subr.bf16.mxu0 %v587_v0 }
  0x2a   :  { %467 = vmatpush3.bf16.msra.mxu1 %v509_v11 }
  0x2b   :  { %468 = vmatprep.subr.bf16.mxu1 %v587_v0  ;;  %483 = vmatpush3.bf16.msra.mxu0 %v515_v27 }
  0x2c   :  { %484 = vmatprep.subr.bf16.mxu0 %v587_v0 }
  0x2e   :  { %469 = vmatpush3.bf16.msra.mxu1 %v510_v12 }
  0x2f   :  { %470 = vmatprep.subr.bf16.mxu1 %v587_v0  ;;  %485 = vmatpush3.bf16.msra.mxu0 %v516_v28 }
  0x30   :  { %486 = vmatprep.subr.bf16.mxu0 %v587_v0 }
  0x32   :  { %471 = vmatpush3.bf16.msra.mxu1 %v511_v13 }
  0x33   :  { %487 = vmatpush3.bf16.msra.mxu0 %v517_v29 }
  0x34   :  { %488 = vmatprep.subr.bf16.mxu0 %v587_v0 }
  0x37   :  { %489 = vmatpush3.bf16.msra.mxu0 %v518_v30 }
  0x38   :  { %490 = vmatprep.subr.bf16.mxu0 %v587_v0 }
  0x3b   :  { %491 = vmatpush3.bf16.msra.mxu0 %v519_v31 }
  0xf0   :  { %v106_v17 = vpop.f32.mrb[0].mxu0 }
  0xf1   :  { %v107_v18 = vadd.f32 %v399_v16, %v106_v17  ;;  %v454_v19 = vpop.f32.mrb[1].mxu0 }
  0xf2   :  { %v109_v20 = vpop.f32.mrb[2].mxu0 }
  0xf3   :  { %v110_v21 = vadd.f32 %v399_v16, %v109_v20  ;;  %v455_v22 = vpop.f32.mrb[3].mxu0  ;;  %520 = vtanh.f32 %v107_v18 }
  0xf5   :  { %522 = vtanh.f32 %v110_v21 }
  0xfd   :  { %v521_v23 = vpop.eup %520 }
  0xff   :  { %v523_v24 = vpop.eup %522 }
 0x100   :  { %v115_v25 = vpack.c.bf16 %v523_v24, %v521_v23 }
 0x102   :  { %473 = vmatmul.mubr.bf16.vlgmr.msra.gmra.mrb[0].mxu1 %v115_v25 }
 0x1d5   :  { %v221_v33 = vpop.f32.mrb[0].mxu1 }
 0x1d6   :  { %v222_v34 = vadd.f32 %v403_v32, %v221_v33  ;;  %v474_v35 = vpop.f32.mrb[1].mxu1 }
 0x1d7   :  { %v224_v36 = vpop.f32.mrb[2].mxu1 }
 0x1d8   :  { %v230_v37 = vmin.f32 %v222_v34, 0.0  ;;  %v225_v38 = vadd.f32 %v403_v32, %v224_v36  ;;  %v475_v39 = vpop.f32.mrb[3].mxu1  ;;  %vm228_vm2 = vcmp.gt.f32.partialorder %v222_v34, 0.0 }
 0x1da   :  { %v232_v40 = vmul.f32 1.442695, %v230_v37  ;;  %v231_v41 = vmin.f32 %v225_v38, 0.0  ;;  %vm229_vm3 = vcmp.gt.f32.partialorder %v225_v38, 0.0 }
 0x1dc   :  { %524 = vpow2.f32 %v232_v40  ;;  %v234_v42 = vmul.f32 1.442695, %v231_v41 }
 0x1de   :  { %526 = vpow2.f32 %v234_v42 }
 0x1e6   :  { %v525_v43 = vpop.eup %524 }
 0x1e7   :  { %v412_v44 = vadd.f32 -1.0, %v525_v43 }
 0x1e8   :  { %v527_v45 = vpop.eup %526 }
 0x1e9   :  { %v413_v46 = vadd.f32 -1.0, %v527_v45  ;;  %v238_v47 = vsel %vm228_vm2, %v222_v34, %v412_v44 }
 0x1eb   :  { %v239_v48 = vsel %vm229_vm3, %v225_v38, %v413_v46 }
 0x1ec   :  { %v240_v49 = vpack.c.bf16 %v239_v48, %v238_v47 }
 0x1ee   :  { %493 = vmatmul.mubr.bf16.vlgmr.msra.gmra.mrb[4].mxu0 %v240_v49 }
 0x2c1   :  { %v346_v51 = vpop.f32.mrb[4].mxu0 }
 0x2c2   :  { %v347_v52 = vadd.f32 %v414_v50, %v346_v51  ;;  %v494_v53 = vpop.f32.mrb[5].mxu0 }
 0x2c3   :  { %v349_v54 = vpop.f32.mrb[6].mxu0 }
 0x2c4   :  { %v353_v55 = vand.u32 2147483647, %v347_v52  ;;  %v350_v56 = vadd.f32 %v414_v50, %v349_v54  ;;  %v495_v57 = vpop.f32.mrb[7].mxu0  ;;  %vm365_vm4 = vcmp.ge.f32.partialorder %v347_v52, 0.0 }
 0x2c6   :  { %v355_v58 = vsub.f32 0.0, %v353_v55  ;;  %v354_v59 = vand.u32 2147483647, %v350_v56  ;;  %vm366_vm6 = vcmp.ge.f32.partialorder %v350_v56, 0.0 }
 0x2c8   :  { %v357_v60 = vmul.f32 1.442695, %v355_v58  ;;  %v356_v61 = vsub.f32 0.0, %v354_v59 }
 0x2ca   :  { %528 = vpow2.f32 %v357_v60  ;;  %v359_v62 = vmul.f32 1.442695, %v356_v61 }
 0x2cc   :  { %530 = vpow2.f32 %v359_v62 }
 0x2d4   :  { %v529_v63 = vpop.eup %528 }
 0x2d5   :  { %v361_v0 = vadd.f32 1.0, %v529_v63 }
 0x2d6   :  { %v531_v1 = vpop.eup %530 }
 0x2d7   :  { %532 = vrcp.f32 %v361_v0  ;;  %v362_v2 = vadd.f32 1.0, %v531_v1 }
 0x2d9   :  { %534 = vrcp.f32 %v362_v2 }
 0x2e1   :  { %v533_v3 = vpop.eup %532 }
 0x2e2   :  { %v367_v4 = vmul.f32 %v533_v3, %v529_v63 }
 0x2e3   :  { %v535_v5 = vpop.eup %534 }
 0x2e4   :  { %v369_v6 = vsel %vm365_vm4, %v533_v3, %v367_v4  ;;  %v368_v7 = vmul.f32 %v535_v5, %v531_v1 }
 0x2e5   :  { %v425_v8 = vpack.c.bf16 %v369_v6, %v369_v6 }
 0x2e6   :  { %v370_v9 = vsel %vm366_vm6, %v535_v5, %v368_v7 }
 0x2e7   :  { %v426_v10 = vpack.c.bf16 %v370_v9, %v370_v9  ;;  %380 = vst.msk [vmem:[#allocation5] sm:$0xf] %vm379_vm5, %v425_v8 }
 0x2e9   :  { %381 = vst.msk [vmem:[#allocation5 + $0x4] sm:$0xf] %vm379_vm5, %v426_v10 }
 0x2ea   :  { %569 = shalt.err (!%p566_p12)
}
 0x2eb   :  { %s570_s9 = scalar_lea.hbm %s754_s7, 128 }
 0x2ec   :  { %p571_p13 = scmp.ne.s32.totalorder %s754_s7, %s570_s9  ;;  %p574_p0 = scmp.lt.u32.totalorder %s570_s9, %s754_s7 }
 0x2ee   :  { %p576_p1 = pnand %p574_p0, %p571_p13 }
 0x2f0   :  { %579 = shalt.err (!%p576_p1)
}
 0x2f1   :  { %393 = dma.vmem_to_hbm [thread:$0]  %s388_s28, 128, %s754_s7, [#allocation4], %s585_s11, %s585_s11, %s586_s12  }
 0x2f2   :  { %582 = dma.done.wait [#allocation4], 128  }
 0x2f3   :  { %583 = vsyncadd [#allocation4], 4294967168 }
 0x2f4   :  { %397 = vsyncpa [#allocation3], 1 }
 0x2f5   :  { %398 = vsyncpa [#allocation4], 1 }

</bundles_post_ra>
